<compile_context>
chip_gen: v6e
topology: v6e:2x2x1
jax: 0.10.0
libtpu: 0.0.40
codegen_flags: <defaults>
</compile_context>

<pallas_src>
import functools

import jax
import jax.numpy as jnp
from jax.experimental import pallas as pl
from jax.experimental.pallas import tpu as pltpu

_INV_SQRT2 = 0.7071067811865476


def _vmem_limit_bytes():
    """Generation-aware scoped-VMEM limit (v5e/v6e: 128 MiB physical;
    v7x: 64 MiB physical -> stay conservative for unknown/new chips)."""
    try:
        kind = jax.devices()[0].device_kind.lower()
    except Exception:
        kind = ""
    if "v5" in kind or "v6" in kind:
        return 100 * 1024 * 1024
    return 44 * 1024 * 1024


def _choose_block(total, per_unit_bytes, budget_bytes, align=128,
                  cap=None, allow_split=True):
    """Pick a block size along an axis of extent `total` given a VMEM byte
    budget (double-buffered).  Preference order:
      (a) one full-extent block,
      (b) two aligned halves (so both TensorCores get work),
      (c) a divisor of `total` that is a multiple of `align` (no padding),
      (d) pad as a last resort.
    Returns (block, padded_total)."""
    max_blk = budget_bytes // (2 * per_unit_bytes)        # 2x: double-buffered
    if cap is not None:
        max_blk = min(max_blk, cap)
    max_blk = max(align, max_blk)
    if total <= max_blk:
        if allow_split and total % (2 * align) == 0:
            return total // 2, total
        return total, total
    blk = (max_blk // align) * align
    for cand in range(blk, align - 1, -align):            # prefer divisor
        if total % cand == 0:
            return cand, total
    return blk, pl.cdiv(total, blk) * blk


# ----------------------------------------------------------------------------
# Kernel 1a (small width, 2*Ci < 128): modes-on-lanes VPU spectral multiply.
#   out[b, o, m] = sum_i x[b, i, m] * w[i, o, m]   (complex, split real/imag)
# Every block is lane-dense in the flattened mode axis M2.
# ----------------------------------------------------------------------------
def _spectral_vpu_kernel(x_ref, wr_ref, wi_ref, o_ref, *, ci):
    x = x_ref[...]                                       # (B, 2Ci, M)
    co = wr_ref.shape[1]
    acc_r = jnp.zeros((x.shape[0], co, x.shape[-1]), jnp.float32)
    acc_i = jnp.zeros((x.shape[0], co, x.shape[-1]), jnp.float32)
    for i in range(ci):                                  # unrolled; ci < 64 here
        xr_i = x[:, i:i + 1, :]                          # (B, 1, M)
        xi_i = x[:, ci + i:ci + i + 1, :]                # (B, 1, M)
        wr_i = wr_ref[i][None]                           # (1, Co, M)
        wi_i = wi_ref[i][None]                           # (1, Co, M)
        acc_r = acc_r + xr_i * wr_i - xi_i * wi_i
        acc_i = acc_i + xr_i * wi_i + xi_i * wr_i
    o_ref[:, :co, :] = acc_r
    o_ref[:, co:, :] = acc_i


def _spectral_mul_vpu(x1, x2, wr, wi, m1, m2):
    """x1/x2: (B, Ci, m1, m2) complex64; wr/wi: (Ci, Co, 2*m1*m2) f32 packed.
    Returns (s1, s2), each (B, Co, m1, m2) == torch.einsum('bixy,ioxy->boxy')."""
    B, Ci = x1.shape[0], x1.shape[1]
    Co = wr.shape[1]
    M2 = 2 * m1 * m2

    # Keep x_ft's natural (B, Ci, modes) order, modes lane-dense; no transpose.
    xs_c = jnp.concatenate([x1, x2], axis=2).reshape(B, Ci, M2)
    xs = jnp.concatenate([jnp.real(xs_c), jnp.imag(xs_c)],
                         axis=1).astype(jnp.float32)          # (B, 2Ci, M2)

    # per-mode bytes: x + (wr, wi) + out + in-kernel accumulators
    per_mode = 4 * (B * 2 * Ci + 2 * Ci * Co + 2 * B * 2 * Co)
    budget = int(0.7 * _vmem_limit_bytes())
    mblk, mt = _choose_block(M2, per_mode, budget, align=128)
    if mt != M2:                                   # rare: ragged & over budget
        pad = ((0, 0), (0, 0), (0, mt - M2))
        xs, wr, wi = jnp.pad(xs, pad), jnp.pad(wr, pad), jnp.pad(wi, pad)

    out = pl.pallas_call(
        functools.partial(_spectral_vpu_kernel, ci=Ci),
        out_shape=jax.ShapeDtypeStruct((B, 2 * Co, mt), jnp.float32),
        grid=(mt // mblk,),
        in_specs=[pl.BlockSpec((B, 2 * Ci, mblk), lambda m: (0, 0, m)),
                  pl.BlockSpec((Ci, Co, mblk), lambda m: (0, 0, m)),
                  pl.BlockSpec((Ci, Co, mblk), lambda m: (0, 0, m))],
        out_specs=pl.BlockSpec((B, 2 * Co, mblk), lambda m: (0, 0, m)),
        compiler_params=pltpu.CompilerParams(
            dimension_semantics=("parallel",),
            vmem_limit_bytes=_vmem_limit_bytes()),
    )(xs, wr, wi)

    if mt != M2:
        out = out[:, :, :M2]
    out_c = (out[:, :Co, :] + 1j * out[:, Co:, :]).astype(jnp.complex64)
    out_c = out_c.reshape(B, Co, 2 * m1, m2)
    return out_c[:, :, :m1, :], out_c[:, :, m1:, :]


# ----------------------------------------------------------------------------
# Kernel 1b (large width, 2*Ci >= 128): fused real MXU matmul per mode block.
#   [xr|xi] @ [[wr, wi], [-wi, wr]] = [real | imag]; matmul dims are >= 128
#   so loads/stores are lane-dense.  (Best when B is also >= ~8.)
# ----------------------------------------------------------------------------
def _spectral_mxu_kernel(xc_ref, wc_ref, o_ref):
    # DEFAULT matmul precision chosen deliberately for speed.
    o_ref[...] = jnp.einsum(
        "mbk,mkn->mbn", xc_ref[...], wc_ref[...],
        preferred_element_type=jnp.float32)


def _spectral_mul_mxu(x1, x2, wc, m1, m2):
    B, Ci = x1.shape[0], x1.shape[1]
    Co = wc.shape[2] // 2
    M2 = 2 * m1 * m2

    xs_c = jnp.concatenate([x1, x2], axis=2).reshape(B, Ci, M2)
    xm = jnp.transpose(xs_c, (2, 0, 1))                        # (M2, B, Ci)
    xc = jnp.concatenate([jnp.real(xm), jnp.imag(xm)],
                         axis=-1).astype(jnp.float32)          # (M2, B, 2Ci)

    per_mode = 4 * (B * 2 * Ci + 2 * Ci * 2 * Co + 2 * B * 2 * Co)
    budget = int(0.7 * _vmem_limit_bytes())
    mblk, mt = _choose_block(M2, per_mode, budget, align=8)
    if mt != M2:
        xc = jnp.pad(xc, ((0, mt - M2), (0, 0), (0, 0)))
        wc = jnp.pad(wc, ((0, mt - M2), (0, 0), (0, 0)))

    out = pl.pallas_call(
        _spectral_mxu_kernel,
        out_shape=jax.ShapeDtypeStruct((mt, B, 2 * Co), jnp.float32),
        grid=(mt // mblk,),
        in_specs=[pl.BlockSpec((mblk, B, 2 * Ci), lambda m: (m, 0, 0)),
                  pl.BlockSpec((mblk, 2 * Ci, 2 * Co), lambda m: (m, 0, 0))],
        out_specs=pl.BlockSpec((mblk, B, 2 * Co), lambda m: (m, 0, 0)),
        compiler_params=pltpu.CompilerParams(
            dimension_semantics=("parallel",),
            vmem_limit_bytes=_vmem_limit_bytes()),
    )(xc, wc)

    if mt != M2:
        out = out[:M2]
    out_c = (out[..., :Co] + 1j * out[..., Co:]).astype(jnp.complex64)
    out_c = jnp.transpose(out_c, (1, 2, 0)).reshape(B, Co, 2 * m1, m2)
    return out_c[:, :, :m1, :], out_c[:, :, m1:, :]


# ----------------------------------------------------------------------------
# Kernel 2: 1x1 conv over channels + add spectral branch + exact GELU
#   y2[o, p] = sum_i W[o, i] * x[i, p] + bias[o];   out = gelu(y1 + y2)
#   grid over (batch, P-tiles); each block is lane-dense (C, TP).
# ----------------------------------------------------------------------------
def _pointwise_gelu_kernel(x_ref, y1_ref, w_ref, b_ref, o_ref):
    x = x_ref[0]                                                 # (C, TP)
    # DEFAULT matmul precision chosen deliberately for speed (HBM-bound stage).
    y2 = jnp.dot(w_ref[...], x,
                 preferred_element_type=jnp.float32) + b_ref[...]
    y = y1_ref[0] + y2
    # exact (erf-based) GELU, matching torch.nn.functional.gelu default
    o_ref[0] = 0.5 * y * (1.0 + jax.lax.erf(y * _INV_SQRT2))


def pointwise_add_gelu(x_flat, y1_flat, w0_weight, w0_bias):
    B, C, P = x_flat.shape
    budget = int(0.7 * _vmem_limit_bytes())
    per_lane = 4 * 3 * C                 # x + y1 + out columns, f32
    tp, pp = _choose_block(P, per_lane, budget, align=128, cap=8192,
                           allow_split=(B == 1))   # split only if B alone can't
    if pp != P:                          # rare: ragged P and over budget
        pad = ((0, 0), (0, 0), (0, pp - P))
        x_flat, y1_flat = jnp.pad(x_flat, pad), jnp.pad(y1_flat, pad)
    n_p = pp // tp

    out = pl.pallas_call(
        _pointwise_gelu_kernel,
        out_shape=jax.ShapeDtypeStruct((B, C, pp), jnp.float32),
        grid=(B, n_p),
        in_specs=[pl.BlockSpec((1, C, tp), lambda b, p: (b, 0, p)),
                  pl.BlockSpec((1, C, tp), lambda b, p: (b, 0, p)),
                  pl.BlockSpec((C, C), lambda b, p: (0, 0)),
                  pl.BlockSpec((C, 1), lambda b, p: (0, 0))],
        out_specs=pl.BlockSpec((1, C, tp), lambda b, p: (b, 0, p)),
        compiler_params=pltpu.CompilerParams(
            dimension_semantics=("parallel", "parallel"),
            vmem_limit_bytes=_vmem_limit_bytes()),
    )(x_flat, y1_flat, w0_weight, w0_bias)
    return out[:, :, :P] if pp != P else out


# ----------------------------------------------------------------------------
# Full FourierLayer2D forward
# ----------------------------------------------------------------------------
def fourier_layer_2d(x, params, modes1, modes2):
    B, C, N1, N2 = x.shape
    Nf = N2 // 2 + 1

    # TODO(synk): rfft2 / irfft2 have no Pallas equivalent; done in plain JAX.
    x_ft = jnp.fft.rfft2(x)                            # (B, C, N1, Nf) complex64

    x1 = x_ft[:, :, :modes1, :modes2]
    x2 = x_ft[:, :, N1 - modes1:, :modes2]
    if "spec_wr" in params:                            # small width: VPU path
        s1, s2 = _spectral_mul_vpu(x1, x2, params["spec_wr"],
                                   params["spec_wi"], modes1, modes2)
    else:                                              # large width: MXU path
        s1, s2 = _spectral_mul_mxu(x1, x2, params["spec_wc"], modes1, modes2)

    Co = s1.shape[1]
    pad_cols = Nf - modes2
    if 2 * modes1 <= N1:
        # pad/concat instead of zeros + scatter (lets XLA fuse into irfft2 input)
        top = jnp.pad(s1, ((0, 0), (0, 0), (0, 0), (0, pad_cols)))
        bot = jnp.pad(s2, ((0, 0), (0, 0), (0, 0), (0, pad_cols)))
        mid = jnp.zeros((B, Co, N1 - 2 * modes1, Nf), dtype=s1.dtype)
        out_ft = jnp.concatenate([top, mid, bot], axis=2)
    else:
        # overlapping slabs: keep torch's overwrite semantics
        out_ft = jnp.zeros((B, Co, N1, Nf), dtype=jnp.complex64)
        out_ft = out_ft.at[:, :, :modes1, :modes2].set(s1)
        out_ft = out_ft.at[:, :, N1 - modes1:, :modes2].set(s2)

    y1 = jnp.fft.irfft2(out_ft, s=(N1, N2)).astype(jnp.float32)  # (B, Co, N1, N2)

    P = N1 * N2
    out = pointwise_add_gelu(x.reshape(B, C, P).astype(jnp.float32),
                             y1.reshape(B, Co, P),
                             params["w0_weight"], params["w0_bias"])
    return out.reshape(B, Co, N1, N2)


# ----------------------------------------------------------------------------
# Parameter init (shapes from the module's __init__) + one-time weight packing
# ----------------------------------------------------------------------------
def init_params(key, width, modes1, modes2):
    k1, k2, k3, k4, k5, k6 = jax.random.split(key, 6)
    scale = 1.0 / (width * width)
    shape_w = (width, width, modes1, modes2)
    w1 = scale * (jax.random.uniform(k1, shape_w, jnp.float32)
                  + 1j * jax.random.uniform(k2, shape_w, jnp.float32))
    w2 = scale * (jax.random.uniform(k3, shape_w, jnp.float32)
                  + 1j * jax.random.uniform(k4, shape_w, jnp.float32))
    bound = 1.0 / (width ** 0.5)                 # Conv1d default-style init
    w0_w = jax.random.uniform(k5, (width, width), jnp.float32, -bound, bound)
    w0_b = jax.random.uniform(k6, (width, 1), jnp.float32, -bound, bound)
    return dict(weights1=w1.astype(jnp.complex64),
                weights2=w2.astype(jnp.complex64),
                w0_weight=w0_w, w0_bias=w0_b)


def prepare_params(params, modes1, modes2):
    """One-time packing of spectral weights into the kernel layout
    (done once at parameter-load time, NOT per forward)."""
    w1, w2 = params["weights1"], params["weights2"]
    Ci, Co = w1.shape[0], w1.shape[1]
    M2 = 2 * modes1 * modes2
    w = jnp.concatenate([w1, w2], axis=2).reshape(Ci, Co, M2)
    prepared = dict(w0_weight=params["w0_weight"], w0_bias=params["w0_bias"])
    if 2 * Ci < 128:
        # modes-on-lanes VPU layout: (Ci, Co, M2) real + imag slabs
        prepared["spec_wr"] = jnp.real(w).astype(jnp.float32)
        prepared["spec_wi"] = jnp.imag(w).astype(jnp.float32)
    else:
        # fused real-matmul MXU layout: (M2, 2Ci, 2Co) = [[wr, wi], [-wi, wr]]
        wm = jnp.transpose(w, (2, 0, 1))                      # (M2, Ci, Co)
        wr_, wi_ = jnp.real(wm), jnp.imag(wm)
        prepared["spec_wc"] = jnp.concatenate(
            [jnp.concatenate([wr_, wi_], axis=-1),
             jnp.concatenate([-wi_, wr_], axis=-1)], axis=1).astype(jnp.float32)
    return prepared


if __name__ == "__main__":
    width, modes1, modes2 = 8, 4, 4
    B, N = 2, 16

    key = jax.random.PRNGKey(0)
    kp, kx = jax.random.split(key)
    params = init_params(kp, width, modes1, modes2)
    prepared = prepare_params(params, modes1, modes2)
    x = jax.random.normal(kx, (B, width, N, N), dtype=jnp.float32)

    fwd = jax.jit(lambda xx: fourier_layer_2d(xx, prepared, modes1, modes2))
    out = fwd(x)
    jax.block_until_ready(out)
    assert out.shape == (B, width, N, N)
    assert bool(jnp.all(jnp.isfinite(out)))
    print("KERNEL_OK")
</pallas_src>

<mosaic_0001>
module attributes {stable_mosaic.version = 11 : i64} {
  func.func @_spectral_vpu_kernel(%arg0: i32, %arg1: memref<2x16x32xf32, #tpu.memory_space<vmem>>, %arg2: memref<8x8x32xf32, #tpu.memory_space<vmem>>, %arg3: memref<8x8x32xf32, #tpu.memory_space<vmem>>, %arg4: memref<2x16x32xf32, #tpu.memory_space<vmem>>) attributes {dimension_semantics = [#tpu.dimension_semantics<parallel>], iteration_bounds = array<i64: 1>, scalar_prefetch = 0 : i64, scratch_operands = 0 : i64, tpu.core_type = #tpu.core_type<tc>, window_params = [{transform_indices = @transform_0, window_bounds = array<i64: 2, 16, 32>}, {transform_indices = @transform_1, window_bounds = array<i64: 8, 8, 32>}, {transform_indices = @transform_2, window_bounds = array<i64: 8, 8, 32>}, {transform_indices = @transform_3, window_bounds = array<i64: 2, 16, 32>}]} {
    %c0 = arith.constant 0 : index
    %c0_0 = arith.constant 0 : index
    %c0_1 = arith.constant 0 : index
    %0 = vector.load %arg1[%c0, %c0_0, %c0_1] : memref<2x16x32xf32, #tpu.memory_space<vmem>>, vector<2x16x32xf32>
    %cst = arith.constant 0.000000e+00 : f32
    %1 = vector.broadcast %cst : f32 to vector<2x8x32xf32>
    %cst_2 = arith.constant 0.000000e+00 : f32
    %2 = vector.broadcast %cst_2 : f32 to vector<2x8x32xf32>
    %3 = vector.extract_strided_slice %0 {offsets = [0, 0, 0], sizes = [2, 1, 32], strides = [1, 1, 1]} : vector<2x16x32xf32> to vector<2x1x32xf32>
    %4 = vector.extract_strided_slice %0 {offsets = [0, 8, 0], sizes = [2, 1, 32], strides = [1, 1, 1]} : vector<2x16x32xf32> to vector<2x1x32xf32>
    %c0_3 = arith.constant 0 : index
    %c0_4 = arith.constant 0 : index
    %c0_5 = arith.constant 0 : index
    %5 = vector.load %arg2[%c0_3, %c0_4, %c0_5] : memref<8x8x32xf32, #tpu.memory_space<vmem>>, vector<1x8x32xf32>
    %6 = vector.shape_cast %5 : vector<1x8x32xf32> to vector<8x32xf32>
    %7 = vector.shape_cast %6 : vector<8x32xf32> to vector<1x8x32xf32>
    %c0_6 = arith.constant 0 : index
    %c0_7 = arith.constant 0 : index
    %c0_8 = arith.constant 0 : index
    %8 = vector.load %arg3[%c0_6, %c0_7, %c0_8] : memref<8x8x32xf32, #tpu.memory_space<vmem>>, vector<1x8x32xf32>
    %9 = vector.shape_cast %8 : vector<1x8x32xf32> to vector<8x32xf32>
    %10 = vector.shape_cast %9 : vector<8x32xf32> to vector<1x8x32xf32>
    %11 = vector.broadcast %3 : vector<2x1x32xf32> to vector<2x8x32xf32>
    %12 = vector.broadcast %7 : vector<1x8x32xf32> to vector<2x8x32xf32>
    %13 = arith.mulf %11, %12 : vector<2x8x32xf32>
    %14 = arith.addf %1, %13 : vector<2x8x32xf32>
    %15 = vector.broadcast %4 : vector<2x1x32xf32> to vector<2x8x32xf32>
    %16 = vector.broadcast %10 : vector<1x8x32xf32> to vector<2x8x32xf32>
    %17 = arith.mulf %15, %16 : vector<2x8x32xf32>
    %18 = arith.subf %14, %17 : vector<2x8x32xf32>
    %19 = vector.broadcast %3 : vector<2x1x32xf32> to vector<2x8x32xf32>
    %20 = vector.broadcast %10 : vector<1x8x32xf32> to vector<2x8x32xf32>
    %21 = arith.mulf %19, %20 : vector<2x8x32xf32>
    %22 = arith.addf %2, %21 : vector<2x8x32xf32>
    %23 = vector.broadcast %4 : vector<2x1x32xf32> to vector<2x8x32xf32>
    %24 = vector.broadcast %7 : vector<1x8x32xf32> to vector<2x8x32xf32>
    %25 = arith.mulf %23, %24 : vector<2x8x32xf32>
    %26 = arith.addf %22, %25 : vector<2x8x32xf32>
    %27 = vector.extract_strided_slice %0 {offsets = [0, 1, 0], sizes = [2, 1, 32], strides = [1, 1, 1]} : vector<2x16x32xf32> to vector<2x1x32xf32>
    %28 = vector.extract_strided_slice %0 {offsets = [0, 9, 0], sizes = [2, 1, 32], strides = [1, 1, 1]} : vector<2x16x32xf32> to vector<2x1x32xf32>
    %c1 = arith.constant 1 : index
    %c0_9 = arith.constant 0 : index
    %c0_10 = arith.constant 0 : index
    %29 = vector.load %arg2[%c1, %c0_9, %c0_10] : memref<8x8x32xf32, #tpu.memory_space<vmem>>, vector<1x8x32xf32>
    %30 = vector.shape_cast %29 : vector<1x8x32xf32> to vector<8x32xf32>
    %31 = vector.shape_cast %30 : vector<8x32xf32> to vector<1x8x32xf32>
    %c1_11 = arith.constant 1 : index
    %c0_12 = arith.constant 0 : index
    %c0_13 = arith.constant 0 : index
    %32 = vector.load %arg3[%c1_11, %c0_12, %c0_13] : memref<8x8x32xf32, #tpu.memory_space<vmem>>, vector<1x8x32xf32>
    %33 = vector.shape_cast %32 : vector<1x8x32xf32> to vector<8x32xf32>
    %34 = vector.shape_cast %33 : vector<8x32xf32> to vector<1x8x32xf32>
    %35 = vector.broadcast %27 : vector<2x1x32xf32> to vector<2x8x32xf32>
    %36 = vector.broadcast %31 : vector<1x8x32xf32> to vector<2x8x32xf32>
    %37 = arith.mulf %35, %36 : vector<2x8x32xf32>
    %38 = arith.addf %18, %37 : vector<2x8x32xf32>
    %39 = vector.broadcast %28 : vector<2x1x32xf32> to vector<2x8x32xf32>
    %40 = vector.broadcast %34 : vector<1x8x32xf32> to vector<2x8x32xf32>
    %41 = arith.mulf %39, %40 : vector<2x8x32xf32>
    %42 = arith.subf %38, %41 : vector<2x8x32xf32>
    %43 = vector.broadcast %27 : vector<2x1x32xf32> to vector<2x8x32xf32>
    %44 = vector.broadcast %34 : vector<1x8x32xf32> to vector<2x8x32xf32>
    %45 = arith.mulf %43, %44 : vector<2x8x32xf32>
    %46 = arith.addf %26, %45 : vector<2x8x32xf32>
    %47 = vector.broadcast %28 : vector<2x1x32xf32> to vector<2x8x32xf32>
    %48 = vector.broadcast %31 : vector<1x8x32xf32> to vector<2x8x32xf32>
    %49 = arith.mulf %47, %48 : vector<2x8x32xf32>
    %50 = arith.addf %46, %49 : vector<2x8x32xf32>
    %51 = vector.extract_strided_slice %0 {offsets = [0, 2, 0], sizes = [2, 1, 32], strides = [1, 1, 1]} : vector<2x16x32xf32> to vector<2x1x32xf32>
    %52 = vector.extract_strided_slice %0 {offsets = [0, 10, 0], sizes = [2, 1, 32], strides = [1, 1, 1]} : vector<2x16x32xf32> to vector<2x1x32xf32>
    %c2 = arith.constant 2 : index
    %c0_14 = arith.constant 0 : index
    %c0_15 = arith.constant 0 : index
    %53 = vector.load %arg2[%c2, %c0_14, %c0_15] : memref<8x8x32xf32, #tpu.memory_space<vmem>>, vector<1x8x32xf32>
    %54 = vector.shape_cast %53 : vector<1x8x32xf32> to vector<8x32xf32>
    %55 = vector.shape_cast %54 : vector<8x32xf32> to vector<1x8x32xf32>
    %c2_16 = arith.constant 2 : index
    %c0_17 = arith.constant 0 : index
    %c0_18 = arith.constant 0 : index
    %56 = vector.load %arg3[%c2_16, %c0_17, %c0_18] : memref<8x8x32xf32, #tpu.memory_space<vmem>>, vector<1x8x32xf32>
    %57 = vector.shape_cast %56 : vector<1x8x32xf32> to vector<8x32xf32>
    %58 = vector.shape_cast %57 : vector<8x32xf32> to vector<1x8x32xf32>
    %59 = vector.broadcast %51 : vector<2x1x32xf32> to vector<2x8x32xf32>
    %60 = vector.broadcast %55 : vector<1x8x32xf32> to vector<2x8x32xf32>
    %61 = arith.mulf %59, %60 : vector<2x8x32xf32>
    %62 = arith.addf %42, %61 : vector<2x8x32xf32>
    %63 = vector.broadcast %52 : vector<2x1x32xf32> to vector<2x8x32xf32>
    %64 = vector.broadcast %58 : vector<1x8x32xf32> to vector<2x8x32xf32>
    %65 = arith.mulf %63, %64 : vector<2x8x32xf32>
    %66 = arith.subf %62, %65 : vector<2x8x32xf32>
    %67 = vector.broadcast %51 : vector<2x1x32xf32> to vector<2x8x32xf32>
    %68 = vector.broadcast %58 : vector<1x8x32xf32> to vector<2x8x32xf32>
    %69 = arith.mulf %67, %68 : vector<2x8x32xf32>
    %70 = arith.addf %50, %69 : vector<2x8x32xf32>
    %71 = vector.broadcast %52 : vector<2x1x32xf32> to vector<2x8x32xf32>
    %72 = vector.broadcast %55 : vector<1x8x32xf32> to vector<2x8x32xf32>
    %73 = arith.mulf %71, %72 : vector<2x8x32xf32>
    %74 = arith.addf %70, %73 : vector<2x8x32xf32>
    %75 = vector.extract_strided_slice %0 {offsets = [0, 3, 0], sizes = [2, 1, 32], strides = [1, 1, 1]} : vector<2x16x32xf32> to vector<2x1x32xf32>
    %76 = vector.extract_strided_slice %0 {offsets = [0, 11, 0], sizes = [2, 1, 32], strides = [1, 1, 1]} : vector<2x16x32xf32> to vector<2x1x32xf32>
    %c3 = arith.constant 3 : index
    %c0_19 = arith.constant 0 : index
    %c0_20 = arith.constant 0 : index
    %77 = vector.load %arg2[%c3, %c0_19, %c0_20] : memref<8x8x32xf32, #tpu.memory_space<vmem>>, vector<1x8x32xf32>
    %78 = vector.shape_cast %77 : vector<1x8x32xf32> to vector<8x32xf32>
    %79 = vector.shape_cast %78 : vector<8x32xf32> to vector<1x8x32xf32>
    %c3_21 = arith.constant 3 : index
    %c0_22 = arith.constant 0 : index
    %c0_23 = arith.constant 0 : index
    %80 = vector.load %arg3[%c3_21, %c0_22, %c0_23] : memref<8x8x32xf32, #tpu.memory_space<vmem>>, vector<1x8x32xf32>
    %81 = vector.shape_cast %80 : vector<1x8x32xf32> to vector<8x32xf32>
    %82 = vector.shape_cast %81 : vector<8x32xf32> to vector<1x8x32xf32>
    %83 = vector.broadcast %75 : vector<2x1x32xf32> to vector<2x8x32xf32>
    %84 = vector.broadcast %79 : vector<1x8x32xf32> to vector<2x8x32xf32>
    %85 = arith.mulf %83, %84 : vector<2x8x32xf32>
    %86 = arith.addf %66, %85 : vector<2x8x32xf32>
    %87 = vector.broadcast %76 : vector<2x1x32xf32> to vector<2x8x32xf32>
    %88 = vector.broadcast %82 : vector<1x8x32xf32> to vector<2x8x32xf32>
    %89 = arith.mulf %87, %88 : vector<2x8x32xf32>
    %90 = arith.subf %86, %89 : vector<2x8x32xf32>
    %91 = vector.broadcast %75 : vector<2x1x32xf32> to vector<2x8x32xf32>
    %92 = vector.broadcast %82 : vector<1x8x32xf32> to vector<2x8x32xf32>
    %93 = arith.mulf %91, %92 : vector<2x8x32xf32>
    %94 = arith.addf %74, %93 : vector<2x8x32xf32>
    %95 = vector.broadcast %76 : vector<2x1x32xf32> to vector<2x8x32xf32>
    %96 = vector.broadcast %79 : vector<1x8x32xf32> to vector<2x8x32xf32>
    %97 = arith.mulf %95, %96 : vector<2x8x32xf32>
    %98 = arith.addf %94, %97 : vector<2x8x32xf32>
    %99 = vector.extract_strided_slice %0 {offsets = [0, 4, 0], sizes = [2, 1, 32], strides = [1, 1, 1]} : vector<2x16x32xf32> to vector<2x1x32xf32>
    %100 = vector.extract_strided_slice %0 {offsets = [0, 12, 0], sizes = [2, 1, 32], strides = [1, 1, 1]} : vector<2x16x32xf32> to vector<2x1x32xf32>
    %c4 = arith.constant 4 : index
    %c0_24 = arith.constant 0 : index
    %c0_25 = arith.constant 0 : index
    %101 = vector.load %arg2[%c4, %c0_24, %c0_25] : memref<8x8x32xf32, #tpu.memory_space<vmem>>, vector<1x8x32xf32>
    %102 = vector.shape_cast %101 : vector<1x8x32xf32> to vector<8x32xf32>
    %103 = vector.shape_cast %102 : vector<8x32xf32> to vector<1x8x32xf32>
    %c4_26 = arith.constant 4 : index
    %c0_27 = arith.constant 0 : index
    %c0_28 = arith.constant 0 : index
    %104 = vector.load %arg3[%c4_26, %c0_27, %c0_28] : memref<8x8x32xf32, #tpu.memory_space<vmem>>, vector<1x8x32xf32>
    %105 = vector.shape_cast %104 : vector<1x8x32xf32> to vector<8x32xf32>
    %106 = vector.shape_cast %105 : vector<8x32xf32> to vector<1x8x32xf32>
    %107 = vector.broadcast %99 : vector<2x1x32xf32> to vector<2x8x32xf32>
    %108 = vector.broadcast %103 : vector<1x8x32xf32> to vector<2x8x32xf32>
    %109 = arith.mulf %107, %108 : vector<2x8x32xf32>
    %110 = arith.addf %90, %109 : vector<2x8x32xf32>
    %111 = vector.broadcast %100 : vector<2x1x32xf32> to vector<2x8x32xf32>
    %112 = vector.broadcast %106 : vector<1x8x32xf32> to vector<2x8x32xf32>
    %113 = arith.mulf %111, %112 : vector<2x8x32xf32>
    %114 = arith.subf %110, %113 : vector<2x8x32xf32>
    %115 = vector.broadcast %99 : vector<2x1x32xf32> to vector<2x8x32xf32>
    %116 = vector.broadcast %106 : vector<1x8x32xf32> to vector<2x8x32xf32>
    %117 = arith.mulf %115, %116 : vector<2x8x32xf32>
    %118 = arith.addf %98, %117 : vector<2x8x32xf32>
    %119 = vector.broadcast %100 : vector<2x1x32xf32> to vector<2x8x32xf32>
    %120 = vector.broadcast %103 : vector<1x8x32xf32> to vector<2x8x32xf32>
    %121 = arith.mulf %119, %120 : vector<2x8x32xf32>
    %122 = arith.addf %118, %121 : vector<2x8x32xf32>
    %123 = vector.extract_strided_slice %0 {offsets = [0, 5, 0], sizes = [2, 1, 32], strides = [1, 1, 1]} : vector<2x16x32xf32> to vector<2x1x32xf32>
    %124 = vector.extract_strided_slice %0 {offsets = [0, 13, 0], sizes = [2, 1, 32], strides = [1, 1, 1]} : vector<2x16x32xf32> to vector<2x1x32xf32>
    %c5 = arith.constant 5 : index
    %c0_29 = arith.constant 0 : index
    %c0_30 = arith.constant 0 : index
    %125 = vector.load %arg2[%c5, %c0_29, %c0_30] : memref<8x8x32xf32, #tpu.memory_space<vmem>>, vector<1x8x32xf32>
    %126 = vector.shape_cast %125 : vector<1x8x32xf32> to vector<8x32xf32>
    %127 = vector.shape_cast %126 : vector<8x32xf32> to vector<1x8x32xf32>
    %c5_31 = arith.constant 5 : index
    %c0_32 = arith.constant 0 : index
    %c0_33 = arith.constant 0 : index
    %128 = vector.load %arg3[%c5_31, %c0_32, %c0_33] : memref<8x8x32xf32, #tpu.memory_space<vmem>>, vector<1x8x32xf32>
    %129 = vector.shape_cast %128 : vector<1x8x32xf32> to vector<8x32xf32>
    %130 = vector.shape_cast %129 : vector<8x32xf32> to vector<1x8x32xf32>
    %131 = vector.broadcast %123 : vector<2x1x32xf32> to vector<2x8x32xf32>
    %132 = vector.broadcast %127 : vector<1x8x32xf32> to vector<2x8x32xf32>
    %133 = arith.mulf %131, %132 : vector<2x8x32xf32>
    %134 = arith.addf %114, %133 : vector<2x8x32xf32>
    %135 = vector.broadcast %124 : vector<2x1x32xf32> to vector<2x8x32xf32>
    %136 = vector.broadcast %130 : vector<1x8x32xf32> to vector<2x8x32xf32>
    %137 = arith.mulf %135, %136 : vector<2x8x32xf32>
    %138 = arith.subf %134, %137 : vector<2x8x32xf32>
    %139 = vector.broadcast %123 : vector<2x1x32xf32> to vector<2x8x32xf32>
    %140 = vector.broadcast %130 : vector<1x8x32xf32> to vector<2x8x32xf32>
    %141 = arith.mulf %139, %140 : vector<2x8x32xf32>
    %142 = arith.addf %122, %141 : vector<2x8x32xf32>
    %143 = vector.broadcast %124 : vector<2x1x32xf32> to vector<2x8x32xf32>
    %144 = vector.broadcast %127 : vector<1x8x32xf32> to vector<2x8x32xf32>
    %145 = arith.mulf %143, %144 : vector<2x8x32xf32>
    %146 = arith.addf %142, %145 : vector<2x8x32xf32>
    %147 = vector.extract_strided_slice %0 {offsets = [0, 6, 0], sizes = [2, 1, 32], strides = [1, 1, 1]} : vector<2x16x32xf32> to vector<2x1x32xf32>
    %148 = vector.extract_strided_slice %0 {offsets = [0, 14, 0], sizes = [2, 1, 32], strides = [1, 1, 1]} : vector<2x16x32xf32> to vector<2x1x32xf32>
    %c6 = arith.constant 6 : index
    %c0_34 = arith.constant 0 : index
    %c0_35 = arith.constant 0 : index
    %149 = vector.load %arg2[%c6, %c0_34, %c0_35] : memref<8x8x32xf32, #tpu.memory_space<vmem>>, vector<1x8x32xf32>
    %150 = vector.shape_cast %149 : vector<1x8x32xf32> to vector<8x32xf32>
    %151 = vector.shape_cast %150 : vector<8x32xf32> to vector<1x8x32xf32>
    %c6_36 = arith.constant 6 : index
    %c0_37 = arith.constant 0 : index
    %c0_38 = arith.constant 0 : index
    %152 = vector.load %arg3[%c6_36, %c0_37, %c0_38] : memref<8x8x32xf32, #tpu.memory_space<vmem>>, vector<1x8x32xf32>
    %153 = vector.shape_cast %152 : vector<1x8x32xf32> to vector<8x32xf32>
    %154 = vector.shape_cast %153 : vector<8x32xf32> to vector<1x8x32xf32>
    %155 = vector.broadcast %147 : vector<2x1x32xf32> to vector<2x8x32xf32>
    %156 = vector.broadcast %151 : vector<1x8x32xf32> to vector<2x8x32xf32>
    %157 = arith.mulf %155, %156 : vector<2x8x32xf32>
    %158 = arith.addf %138, %157 : vector<2x8x32xf32>
    %159 = vector.broadcast %148 : vector<2x1x32xf32> to vector<2x8x32xf32>
    %160 = vector.broadcast %154 : vector<1x8x32xf32> to vector<2x8x32xf32>
    %161 = arith.mulf %159, %160 : vector<2x8x32xf32>
    %162 = arith.subf %158, %161 : vector<2x8x32xf32>
    %163 = vector.broadcast %147 : vector<2x1x32xf32> to vector<2x8x32xf32>
    %164 = vector.broadcast %154 : vector<1x8x32xf32> to vector<2x8x32xf32>
    %165 = arith.mulf %163, %164 : vector<2x8x32xf32>
    %166 = arith.addf %146, %165 : vector<2x8x32xf32>
    %167 = vector.broadcast %148 : vector<2x1x32xf32> to vector<2x8x32xf32>
    %168 = vector.broadcast %151 : vector<1x8x32xf32> to vector<2x8x32xf32>
    %169 = arith.mulf %167, %168 : vector<2x8x32xf32>
    %170 = arith.addf %166, %169 : vector<2x8x32xf32>
    %171 = vector.extract_strided_slice %0 {offsets = [0, 7, 0], sizes = [2, 1, 32], strides = [1, 1, 1]} : vector<2x16x32xf32> to vector<2x1x32xf32>
    %172 = vector.extract_strided_slice %0 {offsets = [0, 15, 0], sizes = [2, 1, 32], strides = [1, 1, 1]} : vector<2x16x32xf32> to vector<2x1x32xf32>
    %c7 = arith.constant 7 : index
    %c0_39 = arith.constant 0 : index
    %c0_40 = arith.constant 0 : index
    %173 = vector.load %arg2[%c7, %c0_39, %c0_40] : memref<8x8x32xf32, #tpu.memory_space<vmem>>, vector<1x8x32xf32>
    %174 = vector.shape_cast %173 : vector<1x8x32xf32> to vector<8x32xf32>
    %175 = vector.shape_cast %174 : vector<8x32xf32> to vector<1x8x32xf32>
    %c7_41 = arith.constant 7 : index
    %c0_42 = arith.constant 0 : index
    %c0_43 = arith.constant 0 : index
    %176 = vector.load %arg3[%c7_41, %c0_42, %c0_43] : memref<8x8x32xf32, #tpu.memory_space<vmem>>, vector<1x8x32xf32>
    %177 = vector.shape_cast %176 : vector<1x8x32xf32> to vector<8x32xf32>
    %178 = vector.shape_cast %177 : vector<8x32xf32> to vector<1x8x32xf32>
    %179 = vector.broadcast %171 : vector<2x1x32xf32> to vector<2x8x32xf32>
    %180 = vector.broadcast %175 : vector<1x8x32xf32> to vector<2x8x32xf32>
    %181 = arith.mulf %179, %180 : vector<2x8x32xf32>
    %182 = arith.addf %162, %181 : vector<2x8x32xf32>
    %183 = vector.broadcast %172 : vector<2x1x32xf32> to vector<2x8x32xf32>
    %184 = vector.broadcast %178 : vector<1x8x32xf32> to vector<2x8x32xf32>
    %185 = arith.mulf %183, %184 : vector<2x8x32xf32>
    %186 = arith.subf %182, %185 : vector<2x8x32xf32>
    %187 = vector.broadcast %171 : vector<2x1x32xf32> to vector<2x8x32xf32>
    %188 = vector.broadcast %178 : vector<1x8x32xf32> to vector<2x8x32xf32>
    %189 = arith.mulf %187, %188 : vector<2x8x32xf32>
    %190 = arith.addf %170, %189 : vector<2x8x32xf32>
    %191 = vector.broadcast %172 : vector<2x1x32xf32> to vector<2x8x32xf32>
    %192 = vector.broadcast %175 : vector<1x8x32xf32> to vector<2x8x32xf32>
    %193 = arith.mulf %191, %192 : vector<2x8x32xf32>
    %194 = arith.addf %190, %193 : vector<2x8x32xf32>
    %c0_44 = arith.constant 0 : index
    %c0_45 = arith.constant 0 : index
    %c0_46 = arith.constant 0 : index
    %195 = vector.load %arg4[%c0_44, %c0_45, %c0_46] : memref<2x16x32xf32, #tpu.memory_space<vmem>>, vector<2x8x32xf32>
    tpu.vector_store %arg4[%c0_44, %c0_45, %c0_46], %186 {strides = array<i32>} : memref<2x16x32xf32, #tpu.memory_space<vmem>>, vector<2x8x32xf32>,
    %c0_47 = arith.constant 0 : index
    %c8 = arith.constant 8 : index
    %c0_48 = arith.constant 0 : index
    %196 = vector.load %arg4[%c0_47, %c8, %c0_48] : memref<2x16x32xf32, #tpu.memory_space<vmem>>, vector<2x8x32xf32>
    tpu.vector_store %arg4[%c0_47, %c8, %c0_48], %194 {strides = array<i32>} : memref<2x16x32xf32, #tpu.memory_space<vmem>>, vector<2x8x32xf32>,
    return
  }
  func.func @transform_0(%arg0: i32) -> (i32, i32, i32) {
    %c0_i32 = arith.constant 0 : i32
    %c0_i32_0 = arith.constant 0 : i32
    %c0_i32_1 = arith.constant 0 : i32
    return %c0_i32, %c0_i32_0, %arg0 : i32, i32, i32
  }
  func.func @transform_1(%arg0: i32) -> (i32, i32, i32) {
    %c0_i32 = arith.constant 0 : i32
    %c0_i32_0 = arith.constant 0 : i32
    %c0_i32_1 = arith.constant 0 : i32
    return %c0_i32, %c0_i32_0, %arg0 : i32, i32, i32
  }
  func.func @transform_2(%arg0: i32) -> (i32, i32, i32) {
    %c0_i32 = arith.constant 0 : i32
    %c0_i32_0 = arith.constant 0 : i32
    %c0_i32_1 = arith.constant 0 : i32
    return %c0_i32, %c0_i32_0, %arg0 : i32, i32, i32
  }
  func.func @transform_3(%arg0: i32) -> (i32, i32, i32) {
    %c0_i32 = arith.constant 0 : i32
    %c0_i32_0 = arith.constant 0 : i32
    %c0_i32_1 = arith.constant 0 : i32
    return %c0_i32, %c0_i32_0, %arg0 : i32, i32, i32
  }
}

module attributes {stable_mosaic.version = 11 : i64} {
  func.func @_pointwise_gelu_kernel(%arg0: i32, %arg1: i32, %arg2: memref<1x8x256xf32, #tpu.memory_space<vmem>>, %arg3: memref<1x8x256xf32, #tpu.memory_space<vmem>>, %arg4: memref<8x8xf32, #tpu.memory_space<vmem>>, %arg5: memref<8x1xf32, #tpu.memory_space<vmem>>, %arg6: memref<1x8x256xf32, #tpu.memory_space<vmem>>) attributes {dimension_semantics = [#tpu.dimension_semantics<parallel>, #tpu.dimension_semantics<parallel>], iteration_bounds = array<i64: 2, 1>, scalar_prefetch = 0 : i64, scratch_operands = 0 : i64, tpu.core_type = #tpu.core_type<tc>, window_params = [{transform_indices = @transform_0, window_bounds = array<i64: 1, 8, 256>}, {transform_indices = @transform_1, window_bounds = array<i64: 1, 8, 256>}, {pipeline_mode = #tpu.pipeline_mode<synchronous>, transform_indices = @transform_2, window_bounds = array<i64: 8, 8>}, {pipeline_mode = #tpu.pipeline_mode<synchronous>, transform_indices = @transform_3, window_bounds = array<i64: 8, 1>}, {transform_indices = @transform_4, window_bounds = array<i64: 1, 8, 256>}]} {
    %c0 = arith.constant 0 : index
    %c0_0 = arith.constant 0 : index
    %c0_1 = arith.constant 0 : index
    %0 = vector.load %arg2[%c0, %c0_0, %c0_1] : memref<1x8x256xf32, #tpu.memory_space<vmem>>, vector<1x8x256xf32>
    %1 = vector.shape_cast %0 : vector<1x8x256xf32> to vector<8x256xf32>
    %c0_2 = arith.constant 0 : index
    %c0_3 = arith.constant 0 : index
    %2 = vector.load %arg4[%c0_2, %c0_3] : memref<8x8xf32, #tpu.memory_space<vmem>>, vector<8x8xf32>
    %cst = arith.constant dense<0.000000e+00> : vector<8x256xf32>
    %3 = tpu.matmul %2, %1, %cst {dimension_numbers = #tpu.dot_dimension_numbers<[1], [0], [0], [1], [0, 0, 1, 1], [], []>} : vector<8x8xf32>, vector<8x256xf32>, vector<8x256xf32> -> vector<8x256xf32>
    %c0_4 = arith.constant 0 : index
    %c0_5 = arith.constant 0 : index
    %4 = vector.load %arg5[%c0_4, %c0_5] : memref<8x1xf32, #tpu.memory_space<vmem>>, vector<8x1xf32>
    %5 = vector.broadcast %4 : vector<8x1xf32> to vector<8x256xf32>
    %6 = arith.addf %3, %5 : vector<8x256xf32>
    %c0_6 = arith.constant 0 : index
    %c0_7 = arith.constant 0 : index
    %c0_8 = arith.constant 0 : index
    %7 = vector.load %arg3[%c0_6, %c0_7, %c0_8] : memref<1x8x256xf32, #tpu.memory_space<vmem>>, vector<1x8x256xf32>
    %8 = vector.shape_cast %7 : vector<1x8x256xf32> to vector<8x256xf32>
    %9 = arith.addf %8, %6 : vector<8x256xf32>
    %cst_9 = arith.constant 5.000000e-01 : f32
    %10 = vector.broadcast %cst_9 : f32 to vector<8x256xf32>
    %11 = arith.mulf %10, %9 : vector<8x256xf32>
    %cst_10 = arith.constant 0.707106769 : f32
    %12 = vector.broadcast %cst_10 : f32 to vector<8x256xf32>
    %13 = arith.mulf %9, %12 : vector<8x256xf32>
    %14 = math.erf %13 : vector<8x256xf32>
    %cst_11 = arith.constant 1.000000e+00 : f32
    %15 = vector.broadcast %cst_11 : f32 to vector<8x256xf32>
    %16 = arith.addf %15, %14 : vector<8x256xf32>
    %17 = arith.mulf %11, %16 : vector<8x256xf32>
    %c0_12 = arith.constant 0 : index
    %c0_13 = arith.constant 0 : index
    %c0_14 = arith.constant 0 : index
    %18 = vector.load %arg6[%c0_12, %c0_13, %c0_14] : memref<1x8x256xf32, #tpu.memory_space<vmem>>, vector<1x8x256xf32>
    %19 = vector.shape_cast %18 : vector<1x8x256xf32> to vector<8x256xf32>
    %20 = vector.shape_cast %17 : vector<8x256xf32> to vector<1x8x256xf32>
    tpu.vector_store %arg6[%c0_12, %c0_13, %c0_14], %20 {strides = array<i32>} : memref<1x8x256xf32, #tpu.memory_space<vmem>>, vector<1x8x256xf32>,
    return
  }
  func.func @transform_0(%arg0: i32, %arg1: i32) -> (i32, i32, i32) {
    %c0_i32 = arith.constant 0 : i32
    %c0_i32_0 = arith.constant 0 : i32
    return %arg0, %c0_i32, %arg1 : i32, i32, i32
  }
  func.func @transform_1(%arg0: i32, %arg1: i32) -> (i32, i32, i32) {
    %c0_i32 = arith.constant 0 : i32
    %c0_i32_0 = arith.constant 0 : i32
    return %arg0, %c0_i32, %arg1 : i32, i32, i32
  }
  func.func @transform_2(%arg0: i32, %arg1: i32) -> (i32, i32) {
    %c0_i32 = arith.constant 0 : i32
    %c0_i32_0 = arith.constant 0 : i32
    %c0_i32_1 = arith.constant 0 : i32
    return %c0_i32, %c0_i32_0 : i32, i32
  }
  func.func @transform_3(%arg0: i32, %arg1: i32) -> (i32, i32) {
    %c0_i32 = arith.constant 0 : i32
    %c0_i32_0 = arith.constant 0 : i32
    %c0_i32_1 = arith.constant 0 : i32
    return %c0_i32, %c0_i32_0 : i32, i32
  }
  func.func @transform_4(%arg0: i32, %arg1: i32) -> (i32, i32, i32) {
    %c0_i32 = arith.constant 0 : i32
    %c0_i32_0 = arith.constant 0 : i32
    return %arg0, %c0_i32, %arg1 : i32, i32, i32
  }
}

</mosaic_0001>

<bundles_post_ra>
// kernel: _lambda_.2
= control target key start
LH: loop header
LB: loop body
LE: loop exit
PB: predicated region body
PF: predicated region fallthrough
CT: control target
= control target key end

     0   :  { %v20_v0 = vlaneseq  ;;  %vm304_vm0 = vcmask 261120   ;;  %s689_s0 = inlined_call_operand.vmem [shape: f32[2,16,32], index: 0, kind: input, shape index: {}]   ;;  %s690_s1 = inlined_call_operand.vmem [shape: f32[8,8,32], index: 1, kind: input, shape index: {}]   ;;  %s691_s2 = inlined_call_operand.vmem [shape: f32[8,8,32], index: 2, kind: input, shape index: {}]   ;;  %s692_s3 = inlined_call_operand.vmem [shape: f32[2,16,32], index: 3, kind: output, shape index: {}]  }
   0x1   :  { %v350_v2 = vld [vmem:[%s689_s0] sm:$0xff]  ;;  %v355_v3 = vld [vmem:[%s689_s0 + $0x8] sm:$0xff]  ;;  %v401_v20 = vld [vmem:[%s690_s1 + $0x10] sm:$0xff] }
   0x2   :  { %v21_v1 = vshrl.u32 %v20_v0, 7  ;;  %v360_v7 = vld [vmem:[%s690_s1] sm:$0xff]  ;;  %v370_v9 = vld [vmem:[%s690_s1 + $0x8] sm:$0xff]  ;;  %v414_v26 = vld [vmem:[%s689_s0 + $0x10] sm:$0xff] }
   0x3   :  { %v365_v8 = vld [vmem:[%s691_s2] sm:$0xff]  ;;  %v396_v19 = vld [vmem:[%s691_s2 + $0x8] sm:$0xff]  ;;  %v419_v27 = vld [vmem:[%s689_s0 + $0x18] sm:$0xff] }
   0x4   :  { %v22_v4 = vsub.s32 0, %v21_v1  ;;  %v58_v5 = vsub.s32 1, %v21_v1  ;;  %v94_v6 = vsub.s32 2, %v21_v1  ;;  %v130_v14 = vsub.s32 3, %v21_v1  ;;  %v426_v30 = vld [vmem:[%s690_s1 + $0x18] sm:$0xff]  ;;  %v431_v31 = vld [vmem:[%s691_s2 + $0x10] sm:$0xff] }
   0x5   :  { %v166_v25 = vsub.s32 4, %v21_v1  ;;  %v436_v33 = vsub.s32 5, %v21_v1  ;;  %v460_v43 = vld [vmem:[%s691_s2 + $0x18] sm:$0xff]  ;;  %v465_v44 = vld [vmem:[%s690_s1 + $0x20] sm:$0xff]  ;;  %v479_v50 = vsub.s32 6, %v21_v1  ;;  %v498_v59 = vsub.s32 7, %v21_v1 }
   0x6   :  { %v373_v10 = vrot.slane %v350_v2, %v22_v4  ;;  %v376_v11 = vrot.slane %v355_v3, %v22_v4  ;;  %v379_v12 = vrot.slane %v350_v2, %v58_v5  ;;  %v382_v13 = vrot.slane %v355_v3, %v58_v5  ;;  %v503_v61 = vld [vmem:[%s691_s2 + $0x20] sm:$0xff]  ;;  %v508_v62 = vld [vmem:[%s690_s1 + $0x28] sm:$0xff] }
   0x7   :  { %v391_v18 = vrot.slane %v350_v2, %v94_v6  ;;  %v406_v23 = vrot.slane %v355_v3, %v94_v6  ;;  %v409_v24 = vrot.slane %v350_v2, %v130_v14  ;;  %v434_v32 = vrot.slane %v355_v3, %v130_v14 }
   0x8   :  { %v28_v15 = vmul.f32 %v373_v10, %v360_v7  ;;  %v40_v16 = vmul.f32 %v376_v11, %v365_v8  ;;  %v64_v17 = vmul.f32 %v370_v9, %v379_v12  ;;  %v76_v22 = vmul.f32 %v396_v19, %v382_v13 }
   0x9   :  { %v100_v29 = vmul.f32 %v401_v20, %v391_v18  ;;  %v112_v35 = vmul.f32 %v431_v31, %v406_v23  ;;  %v441_v36 = vrot.slane %v414_v26, %v22_v4  ;;  %v444_v37 = vrot.slane %v419_v27, %v22_v4 }
   0xa   :  { %v42_v21 = vsub.f32 %v28_v15, %v40_v16  ;;  %v136_v38 = vmul.f32 %v426_v30, %v409_v24  ;;  %v449_v39 = vrot.slane %v350_v2, %v166_v25  ;;  %v452_v40 = vrot.slane %v414_v26, %v58_v5  ;;  %v528_v16 = vld [vmem:[%s691_s2 + $0x28] sm:$0xff] }
   0xb   :  { %v455_v41 = vrot.slane %v419_v27, %v58_v5  ;;  %v29_v45 = vmul.f32 %v441_v36, %v360_v7  ;;  %v41_v46 = vmul.f32 %v444_v37, %v365_v8  ;;  %v472_v47 = vrot.slane %v414_v26, %v94_v6 }
   0xc   :  { %v66_v28 = vadd.f32 %v64_v17, %v42_v21  ;;  %v148_v48 = vmul.f32 %v460_v43, %v434_v32  ;;  %v477_v49 = vrot.slane %v355_v3, %v166_v25  ;;  %v65_v51 = vmul.f32 %v370_v9, %v452_v40 }
   0xd   :  { %v43_v53 = vsub.f32 %v29_v45, %v41_v46  ;;  %v77_v54 = vmul.f32 %v396_v19, %v455_v41  ;;  %v486_v55 = vrot.slane %v419_v27, %v94_v6  ;;  %v172_v56 = vmul.f32 %v465_v44, %v449_v39 }
   0xe   :  { %v78_v34 = vsub.f32 %v66_v28, %v76_v22  ;;  %v492_v57 = vrot.slane %v350_v2, %v436_v33  ;;  %v496_v58 = vrot.slane %v355_v3, %v436_v33  ;;  %v101_v0 = vmul.f32 %v401_v20, %v472_v47 }
   0xf   :  { %v67_v63 = vadd.f32 %v65_v51, %v43_v53  ;;  %v513_v4 = vrot.slane %v414_v26, %v130_v14  ;;  %v184_v1 = vmul.f32 %v503_v61, %v477_v49  ;;  %v519_v5 = vrot.slane %v350_v2, %v479_v50 }
  0x10   :  { %v102_v42 = vadd.f32 %v100_v29, %v78_v34  ;;  %v523_v6 = vrot.slane %v355_v3, %v479_v50  ;;  %v113_v21 = vmul.f32 %v431_v31, %v486_v55  ;;  %v533_v22 = vrot.slane %v419_v27, %v130_v14 }
  0x11   :  { %v79_v17 = vsub.f32 %v67_v63, %v77_v54  ;;  %v208_v28 = vmul.f32 %v508_v62, %v492_v57  ;;  %v220_v29 = vmul.f32 %v528_v16, %v496_v58  ;;  %v541_v34 = vrot.slane %v350_v2, %v498_v59  ;;  %v558_v2 = vld [vmem:[%s690_s1 + $0x38] sm:$0xff]  ;;  %v574_v54 = vld [vmem:[%s691_s2 + $0x30] sm:$0xff] }
  0x12   :  { %v114_v52 = vsub.f32 %v102_v42, %v112_v35  ;;  %v44_v35 = vmul.f32 %v373_v10, %v365_v8  ;;  %v548_v42 = vld [vmem:[%s690_s1 + $0x30] sm:$0xff]  ;;  %v137_v45 = vmul.f32 %v426_v30, %v513_v4  ;;  %v553_v46 = vrot.slane %v414_v26, %v166_v25 }
  0x13   :  { %695 = vst [vmem:[#allocation2_spill] sm:$0xff] %v541_v34  ;;  %v103_v14 = vadd.f32 %v101_v0, %v79_v17  ;;  %v562_v10 = vrot.slane %v355_v3, %v498_v59  ;;  %v48_v51 = vmul.f32 %v376_v11, %v360_v7  ;;  %v149_v3 = vmul.f32 %v460_v43, %v533_v22 }
  0x14   :  { %v138_v60 = vadd.f32 %v136_v38, %v114_v52  ;;  %v80_v52 = vmul.f32 %v396_v19, %v379_v12  ;;  %v244_v11 = vmul.f32 %v548_v42, %v519_v5  ;;  %v256_v12 = vmul.f32 %v574_v54, %v523_v6 }
  0x15   :  { %696 = vst [vmem:[#allocation3_spill] sm:$0xff] %v562_v10  ;;  %v84_v63 = vmul.f32 %v370_v9, %v382_v13 }
  0x16   :  { %v150_v15 = vsub.f32 %v138_v60, %v148_v48  ;;  %v565_v48 = vrot.slane %v419_v27, %v166_v25  ;;  %v580_v25 = vrot.slane %v414_v26, %v436_v33  ;;  %v50_v60 = vadd.f32 %v48_v51, %v44_v35 }
  0x17   :  { %v116_v35 = vmul.f32 %v431_v31, %v391_v18 }
  0x18   :  { %v174_v38 = vadd.f32 %v172_v56, %v150_v15  ;;  %v115_v56 = vsub.f32 %v103_v14, %v113_v21  ;;  %v280_v15 = vmul.f32 %v558_v2, %v541_v34  ;;  %v173_v21 = vmul.f32 %v465_v44, %v553_v46 }
  0x19   :  { %v185_v13 = vmul.f32 %v503_v61, %v565_v48  ;;  %v45_v34 = vmul.f32 %v441_v36, %v365_v8 }
  0x1a   :  { %v186_v53 = vsub.f32 %v174_v38, %v184_v1  ;;  %v591_v1 = vld [vmem:[%s691_s2 + $0x38] sm:$0xff]  ;;  %v139_v17 = vadd.f32 %v137_v45, %v115_v56  ;;  %v607_v45 = vrot.slane %v419_v27, %v436_v33 }
  0x1b   :  { %v292_v38 = vmul.f32 %v591_v1, %v562_v10  ;;  %v120_v10 = vmul.f32 %v401_v20, %v406_v23  ;;  %v85_v23 = vmul.f32 %v370_v9, %v455_v41  ;;  %v279_v41 = vrot.slane %v414_v26, %v498_v59 }
  0x1c   :  { %v210_v0 = vadd.f32 %v208_v28, %v186_v53  ;;  %v82_v28 = vadd.f32 %v80_v52, %v50_v60  ;;  %v151_v51 = vsub.f32 %v139_v17, %v149_v3  ;;  %v209_v53 = vmul.f32 %v508_v62, %v580_v25 }
  0x1d   :  { %v49_v52 = vmul.f32 %v444_v37, %v360_v7  ;;  %v243_v3 = vrot.slane %v414_v26, %v479_v50  ;;  %v81_v60 = vmul.f32 %v396_v19, %v452_v40  ;;  %v221_v7 = vmul.f32 %v528_v16, %v607_v45 }
  0x1e   :  { %v222_v14 = vsub.f32 %v210_v0, %v220_v29  ;;  %v86_v56 = vadd.f32 %v84_v63, %v82_v28  ;;  %v175_v29 = vadd.f32 %v173_v21, %v151_v51  ;;  %v152_v63 = vmul.f32 %v460_v43, %v409_v24 }
  0x1f   :  { %v51_v0 = vadd.f32 %v49_v52, %v45_v34  ;;  %v255_v37 = vrot.slane %v419_v27, %v479_v50  ;;  %v156_v19 = vmul.f32 %v426_v30, %v434_v32  ;;  %v117_v24 = vmul.f32 %v431_v31, %v472_v47 }
  0x20   :  { %v246_v18 = vadd.f32 %v244_v11, %v222_v14  ;;  %v118_v33 = vadd.f32 %v116_v35, %v86_v56  ;;  %v187_v36 = vsub.f32 %v175_v29, %v185_v13  ;;  %v245_v9 = vmul.f32 %v548_v42, %v243_v3 }
  0x21   :  { %v83_v40 = vadd.f32 %v81_v60, %v51_v0  ;;  %v188_v21 = vmul.f32 %v503_v61, %v449_v39  ;;  %v257_v28 = vmul.f32 %v574_v54, %v255_v37  ;;  %v291_v31 = vrot.slane %v419_v27, %v498_v59  ;;  %v698_v0 = vld [vmem:[#allocation3_spill] sm:$0xff] }
  0x22   :  { %v258_v8 = vsub.f32 %v246_v18, %v256_v12  ;;  %v122_v11 = vadd.f32 %v120_v10, %v118_v33  ;;  %v211_v17 = vadd.f32 %v209_v53, %v187_v36  ;;  %v121_v10 = vmul.f32 %v401_v20, %v486_v55 }
  0x23   :  { %v87_v50 = vadd.f32 %v85_v23, %v83_v40  ;;  %v153_v35 = vmul.f32 %v460_v43, %v513_v4  ;;  %v281_v39 = vmul.f32 %v558_v2, %v279_v41  ;;  %v224_v27 = vmul.f32 %v528_v16, %v492_v57 }
  0x24   :  { %v282_v34 = vadd.f32 %v280_v15, %v258_v8  ;;  %v154_v12 = vadd.f32 %v152_v63, %v122_v11  ;;  %v223_v13 = vsub.f32 %v211_v17, %v221_v7  ;;  %v192_v15 = vmul.f32 %v465_v44, %v477_v49 }
  0x25   :  { %v119_v26 = vadd.f32 %v117_v24, %v87_v50  ;;  %v157_v49 = vmul.f32 %v426_v30, %v533_v22  ;;  %v293_v14 = vmul.f32 %v591_v1, %v291_v31  ;;  %v228_v4 = vmul.f32 %v508_v62, %v496_v58 }
  0x26   :  { %v294_v32 = vsub.f32 %v282_v34, %v292_v38  ;;  %v158_v47 = vadd.f32 %v156_v19, %v154_v12  ;;  %v247_v20 = vadd.f32 %v245_v9, %v223_v13  ;;  %v189_v53 = vmul.f32 %v503_v61, %v553_v46 }
  0x27   :  { %v123_v59 = vadd.f32 %v121_v10, %v119_v26  ;;  %v260_v57 = vmul.f32 %v574_v54, %v519_v5  ;;  %v193_v30 = vmul.f32 %v465_v44, %v565_v48  ;;  %v264_v60 = vmul.f32 %v548_v42, %v523_v6  ;;  %v697_v5 = vld [vmem:[#allocation2_spill] sm:$0xff] }
  0x28   :  { %305 = vst.msk [vmem:[%s692_s3] sm:$0xff] %vm304_vm0, %v294_v32  ;;  %v190_v55 = vadd.f32 %v188_v21, %v158_v47  ;;  %v259_v38 = vsub.f32 %v247_v20, %v257_v28  ;;  %v225_v58 = vmul.f32 %v528_v16, %v580_v25  ;;  %v296_v46 = vmul.f32 %v591_v1, %v697_v5 }
  0x29   :  { %v155_v51 = vadd.f32 %v153_v35, %v123_v59  ;;  %v229_v44 = vmul.f32 %v508_v62, %v607_v45  ;;  %v300_v6 = vmul.f32 %v558_v2, %v698_v0  ;;  %v261_v16 = vmul.f32 %v574_v54, %v243_v3 }
  0x2a   :  { %v194_v43 = vadd.f32 %v192_v15, %v190_v55  ;;  %v283_v56 = vadd.f32 %v281_v39, %v259_v38  ;;  %v265_v36 = vmul.f32 %v548_v42, %v255_v37  ;;  %v297_v19 = vmul.f32 %v591_v1, %v279_v41 }
  0x2b   :  { %v159_v18 = vadd.f32 %v157_v49, %v155_v51  ;;  %v301_v45 = vmul.f32 %v558_v2, %v291_v31 }
  0x2c   :  { %v226_v52 = vadd.f32 %v224_v27, %v194_v43  ;;  %v295_v22 = vsub.f32 %v283_v56, %v293_v14 }
  0x2d   :  { %v191_v33 = vadd.f32 %v189_v53, %v159_v18 }
  0x2e   :  { %v230_v29 = vadd.f32 %v228_v4, %v226_v52  ;;  %306 = vst.msk [vmem:[%s692_s3 + $0x10] sm:$0xff] %vm304_vm0, %v295_v22 }
  0x2f   :  { %v195_v63 = vadd.f32 %v193_v30, %v191_v33 }
  0x30   :  { %v262_v61 = vadd.f32 %v260_v57, %v230_v29 }
  0x31   :  { %v227_v23 = vadd.f32 %v225_v58, %v195_v63 }
  0x32   :  { %v266_v48 = vadd.f32 %v264_v60, %v262_v61 }
  0x33   :  { %v231_v8 = vadd.f32 %v229_v44, %v227_v23 }
  0x34   :  { %v298_v25 = vadd.f32 %v296_v46, %v266_v48 }
  0x35   :  { %v263_v11 = vadd.f32 %v261_v16, %v231_v8 }
  0x36   :  { %v302_v7 = vadd.f32 %v300_v6, %v298_v25 }
  0x37   :  { %v267_v62 = vadd.f32 %v265_v36, %v263_v11 }
  0x38   :  { %307 = vst.msk [vmem:[%s692_s3 + $0x8] sm:$0xff] %vm304_vm0, %v302_v7 }
  0x39   :  { %v299_v40 = vadd.f32 %v297_v19, %v267_v62 }
  0x3b   :  { %v303_v24 = vadd.f32 %v301_v45, %v299_v40 }
  0x3d   :  { %308 = vst.msk [vmem:[%s692_s3 + $0x18] sm:$0xff] %vm304_vm0, %v303_v24 }

// kernel: reverse.0
= control target key start
LH: loop header
LB: loop body
LE: loop exit
PB: predicated region body
PF: predicated region fallthrough
CT: control target
= control target key end

     0   :  { %v104_v3 = vlaneseq  ;;  %v97_v18 = vld [vmem:[#allocation0 + $0x7] ss:$-1 sm:$0xff]  ;;  %v111_v19 = vld [vmem:[#allocation0 + $0x17] ss:$-1 sm:$0xff]  ;;  %s606_s0 = inlined_call_operand.vmem [shape: f32[2,8,16,7], index: 0, kind: input, shape index: {}]   ;;  %s607_s1 = inlined_call_operand.vmem [shape: f32[2,8,16,7], index: 1, kind: output, shape index: {}]  }
   0x1   :  { %v61_v0 = vld [vmem:[%s606_s0] sm:$0xff]  ;;  %v63_v1 = vld [vmem:[%s606_s0 + $0x8] sm:$0xff]  ;;  %v65_v2 = vld [vmem:[%s606_s0 + $0x10] sm:$0xff]  ;;  %v98_v20 = vrot.slane %v97_v18, 1  ;;  %v112_v21 = vrot.slane %v111_v19, 1 }
   0x2   :  { %62 = vst [vmem:[#allocation0 + $0x8] sm:$0xff] %v61_v0  ;;  %64 = vst [vmem:[#allocation0 + $0x18] sm:$0xff] %v63_v1  ;;  %v67_v4 = vld [vmem:[%s606_s0 + $0x18] sm:$0xff]  ;;  %v69_v5 = vld [vmem:[%s606_s0 + $0x20] sm:$0xff]  ;;  %v502_v10 = vshrl.u32 %v104_v3, 7 }
   0x3   :  { %66 = vst [vmem:[#allocation0 + $0x28] sm:$0xff] %v65_v2  ;;  %v71_v6 = vld [vmem:[%s606_s0 + $0x28] sm:$0xff]  ;;  %68 = vst [vmem:[#allocation0 + $0x38] sm:$0xff] %v67_v4  ;;  %v73_v7 = vld [vmem:[%s606_s0 + $0x30] sm:$0xff] }
   0x4   :  { %70 = vst [vmem:[#allocation0 + $0x48] sm:$0xff] %v69_v5  ;;  %72 = vst [vmem:[#allocation0 + $0x58] sm:$0xff] %v71_v6  ;;  %v75_v8 = vld [vmem:[%s606_s0 + $0x38] sm:$0xff]  ;;  %v77_v9 = vld [vmem:[%s606_s0 + $0x40] sm:$0xff]  ;;  %vm106_vm0 = vcmp.lt.s32.totalorder %v502_v10, 7 }
   0x5   :  { %74 = vst [vmem:[#allocation0 + $0x68] sm:$0xff] %v73_v7  ;;  %76 = vst [vmem:[#allocation0 + $0x78] sm:$0xff] %v75_v8  ;;  %v79_v11 = vld [vmem:[%s606_s0 + $0x48] sm:$0xff]  ;;  %v81_v12 = vld [vmem:[%s606_s0 + $0x50] sm:$0xff] }
   0x6   :  { %78 = vst [vmem:[#allocation0 + $0x88] sm:$0xff] %v77_v9  ;;  %v83_v13 = vld [vmem:[%s606_s0 + $0x58] sm:$0xff]  ;;  %80 = vst [vmem:[#allocation0 + $0x98] sm:$0xff] %v79_v11  ;;  %v85_v14 = vld [vmem:[%s606_s0 + $0x60] sm:$0xff] }
   0x7   :  { %82 = vst [vmem:[#allocation0 + $0xa8] sm:$0xff] %v81_v12  ;;  %84 = vst [vmem:[#allocation0 + $0xb8] sm:$0xff] %v83_v13  ;;  %v87_v15 = vld [vmem:[%s606_s0 + $0x68] sm:$0xff]  ;;  %v89_v16 = vld [vmem:[%s606_s0 + $0x70] sm:$0xff] }
   0x8   :  { %86 = vst [vmem:[#allocation0 + $0xc8] sm:$0xff] %v85_v14  ;;  %88 = vst [vmem:[#allocation0 + $0xd8] sm:$0xff] %v87_v15  ;;  %v91_v17 = vld [vmem:[%s606_s0 + $0x78] sm:$0xff]  ;;  %v125_v22 = vld [vmem:[#allocation0 + $0x27] ss:$-1 sm:$0xff] }
   0x9   :  { %90 = vst [vmem:[#allocation0 + $0xe8] sm:$0xff] %v89_v16  ;;  %92 = vst [vmem:[#allocation0 + $0xf8] sm:$0xff] %v91_v17  ;;  %v139_v23 = vld [vmem:[#allocation0 + $0x37] ss:$-1 sm:$0xff]  ;;  %v126_v24 = vrot.slane %v125_v22, 1 }
   0xa   :  { %v140_v25 = vrot.slane %v139_v23, 1  ;;  %v153_v26 = vld [vmem:[#allocation0 + $0x47] ss:$-1 sm:$0xff]  ;;  %v167_v27 = vld [vmem:[#allocation0 + $0x57] ss:$-1 sm:$0xff]  ;;  %99 = vst [vmem:[#allocation1] sm:$0xff] %v98_v20 }
   0xb   :  { %v102_v28 = vld [vmem:[#allocation0 + $0xf] ss:$-1 sm:$0xff]  ;;  %113 = vst [vmem:[#allocation1 + $0x8] sm:$0xff] %v112_v21  ;;  %v116_v29 = vld [vmem:[#allocation0 + $0x1f] ss:$-1 sm:$0xff]  ;;  %127 = vst [vmem:[#allocation1 + $0x10] sm:$0xff] %v126_v24 }
   0xc   :  { %v130_v30 = vld [vmem:[#allocation0 + $0x2f] ss:$-1 sm:$0xff]  ;;  %v103_v31 = vrot.slane %v102_v28, 1  ;;  %v117_v32 = vrot.slane %v116_v29, 1  ;;  %141 = vst [vmem:[#allocation1 + $0x18] sm:$0xff] %v140_v25  ;;  %v154_v35 = vrot.slane %v153_v26, 1 }
   0xd   :  { %v131_v33 = vrot.slane %v130_v30, 1  ;;  %v144_v34 = vld [vmem:[#allocation0 + $0x3f] ss:$-1 sm:$0xff]  ;;  %v158_v37 = vld [vmem:[#allocation0 + $0x4f] ss:$-1 sm:$0xff]  ;;  %v168_v38 = vrot.slane %v167_v27, 1 }
   0xe   :  { %v145_v36 = vrot.slane %v144_v34, 1  ;;  %v172_v39 = vld [vmem:[#allocation0 + $0x5f] ss:$-1 sm:$0xff]  ;;  %107 = vst.msk [vmem:[#allocation1] sm:$0xff] %vm106_vm0, %v103_v31  ;;  %121 = vst.msk [vmem:[#allocation1 + $0x8] sm:$0xff] %vm106_vm0, %v117_v32  ;;  %v159_v40 = vrot.slane %v158_v37, 1 }
   0xf   :  { %135 = vst.msk [vmem:[#allocation1 + $0x10] sm:$0xff] %vm106_vm0, %v131_v33  ;;  %155 = vst [vmem:[#allocation1 + $0x20] sm:$0xff] %v154_v35  ;;  %v173_v41 = vrot.slane %v172_v39, 1  ;;  %v181_v42 = vld [vmem:[#allocation0 + $0x67] ss:$-1 sm:$0xff] }
  0x10   :  { %v186_v43 = vld [vmem:[#allocation0 + $0x6f] ss:$-1 sm:$0xff]  ;;  %149 = vst.msk [vmem:[#allocation1 + $0x18] sm:$0xff] %vm106_vm0, %v145_v36  ;;  %169 = vst [vmem:[#allocation1 + $0x28] sm:$0xff] %v168_v38  ;;  %v182_v44 = vrot.slane %v181_v42, 1 }
  0x11   :  { %v187_v45 = vrot.slane %v186_v43, 1  ;;  %v195_v46 = vld [vmem:[#allocation0 + $0x77] ss:$-1 sm:$0xff]  ;;  %v200_v47 = vld [vmem:[#allocation0 + $0x7f] ss:$-1 sm:$0xff]  ;;  %163 = vst.msk [vmem:[#allocation1 + $0x20] sm:$0xff] %vm106_vm0, %v159_v40 }
  0x12   :  { %177 = vst.msk [vmem:[#allocation1 + $0x28] sm:$0xff] %vm106_vm0, %v173_v41  ;;  %v196_v48 = vrot.slane %v195_v46, 1  ;;  %v201_v49 = vrot.slane %v200_v47, 1  ;;  %v209_v50 = vld [vmem:[#allocation0 + $0x87] ss:$-1 sm:$0xff]  ;;  %183 = vst [vmem:[#allocation1 + $0x30] sm:$0xff] %v182_v44 }
  0x13   :  { %v214_v51 = vld [vmem:[#allocation0 + $0x8f] ss:$-1 sm:$0xff]  ;;  %v210_v52 = vrot.slane %v209_v50, 1  ;;  %v223_v54 = vld [vmem:[#allocation0 + $0x97] ss:$-1 sm:$0xff]  ;;  %191 = vst.msk [vmem:[#allocation1 + $0x30] sm:$0xff] %vm106_vm0, %v187_v45 }
  0x14   :  { %v215_v53 = vrot.slane %v214_v51, 1  ;;  %v228_v55 = vld [vmem:[#allocation0 + $0x9f] ss:$-1 sm:$0xff]  ;;  %197 = vst [vmem:[#allocation1 + $0x38] sm:$0xff] %v196_v48  ;;  %v224_v56 = vrot.slane %v223_v54, 1 }
  0x15   :  { %v229_v57 = vrot.slane %v228_v55, 1  ;;  %v237_v58 = vld [vmem:[#allocation0 + $0xa7] ss:$-1 sm:$0xff]  ;;  %v242_v59 = vld [vmem:[#allocation0 + $0xaf] ss:$-1 sm:$0xff]  ;;  %205 = vst.msk [vmem:[#allocation1 + $0x38] sm:$0xff] %vm106_vm0, %v201_v49 }
  0x16   :  { %211 = vst [vmem:[#allocation1 + $0x40] sm:$0xff] %v210_v52  ;;  %v238_v60 = vrot.slane %v237_v58, 1  ;;  %v243_v61 = vrot.slane %v242_v59, 1  ;;  %v251_v62 = vld [vmem:[#allocation0 + $0xb7] ss:$-1 sm:$0xff]  ;;  %225 = vst [vmem:[#allocation1 + $0x48] sm:$0xff] %v224_v56 }
  0x17   :  { %v256_v63 = vld [vmem:[#allocation0 + $0xbf] ss:$-1 sm:$0xff]  ;;  %219 = vst.msk [vmem:[#allocation1 + $0x40] sm:$0xff] %vm106_vm0, %v215_v53  ;;  %v252_v0 = vrot.slane %v251_v62, 1  ;;  %v265_v2 = vld [vmem:[#allocation0 + $0xc7] ss:$-1 sm:$0xff] }
  0x18   :  { %v257_v1 = vrot.slane %v256_v63, 1  ;;  %v270_v3 = vld [vmem:[#allocation0 + $0xcf] ss:$-1 sm:$0xff]  ;;  %233 = vst.msk [vmem:[#allocation1 + $0x48] sm:$0xff] %vm106_vm0, %v229_v57  ;;  %239 = vst [vmem:[#allocation1 + $0x50] sm:$0xff] %v238_v60  ;;  %v266_v4 = vrot.slane %v265_v2, 1 }
  0x19   :  { %v271_v5 = vrot.slane %v270_v3, 1  ;;  %v279_v6 = vld [vmem:[#allocation0 + $0xd7] ss:$-1 sm:$0xff]  ;;  %v284_v7 = vld [vmem:[#allocation0 + $0xdf] ss:$-1 sm:$0xff]  ;;  %247 = vst.msk [vmem:[#allocation1 + $0x50] sm:$0xff] %vm106_vm0, %v243_v61 }
  0x1a   :  { %253 = vst [vmem:[#allocation1 + $0x58] sm:$0xff] %v252_v0  ;;  %v280_v8 = vrot.slane %v279_v6, 1  ;;  %v285_v9 = vrot.slane %v284_v7, 1  ;;  %v293_v11 = vld [vmem:[#allocation0 + $0xe7] ss:$-1 sm:$0xff]  ;;  %267 = vst [vmem:[#allocation1 + $0x60] sm:$0xff] %v266_v4 }
  0x1b   :  { %v298_v12 = vld [vmem:[#allocation0 + $0xef] ss:$-1 sm:$0xff]  ;;  %261 = vst.msk [vmem:[#allocation1 + $0x58] sm:$0xff] %vm106_vm0, %v257_v1  ;;  %v294_v13 = vrot.slane %v293_v11, 1  ;;  %v307_v15 = vld [vmem:[#allocation0 + $0xf7] ss:$-1 sm:$0xff] }
  0x1c   :  { %v299_v14 = vrot.slane %v298_v12, 1  ;;  %v312_v16 = vld [vmem:[#allocation0 + $0xff] ss:$-1 sm:$0xff]  ;;  %275 = vst.msk [vmem:[#allocation1 + $0x60] sm:$0xff] %vm106_vm0, %v271_v5  ;;  %281 = vst [vmem:[#allocation1 + $0x68] sm:$0xff] %v280_v8  ;;  %v308_v17 = vrot.slane %v307_v15, 1 }
  0x1d   :  { %v313_v18 = vrot.slane %v312_v16, 1  ;;  %v376_v19 = vld [vmem:[#allocation1] sm:$0xff]  ;;  %v378_v20 = vld [vmem:[#allocation1 + $0x8] sm:$0xff]  ;;  %v380_v21 = vld [vmem:[#allocation1 + $0x10] sm:$0xff]  ;;  %289 = vst.msk [vmem:[#allocation1 + $0x68] sm:$0xff] %vm106_vm0, %v285_v9 }
  0x1e   :  { %295 = vst [vmem:[#allocation1 + $0x70] sm:$0xff] %v294_v13  ;;  %377 = vst [vmem:[%s607_s1] sm:$0xff] %v376_v19  ;;  %v382_v22 = vld [vmem:[#allocation1 + $0x18] sm:$0xff]  ;;  %v384_v23 = vld [vmem:[#allocation1 + $0x20] sm:$0xff] }
  0x1f   :  { %379 = vst [vmem:[%s607_s1 + $0x8] sm:$0xff] %v378_v20  ;;  %381 = vst [vmem:[%s607_s1 + $0x10] sm:$0xff] %v380_v21  ;;  %v386_v24 = vld [vmem:[#allocation1 + $0x28] sm:$0xff]  ;;  %v388_v25 = vld [vmem:[#allocation1 + $0x30] sm:$0xff] }
  0x20   :  { %303 = vst.msk [vmem:[#allocation1 + $0x70] sm:$0xff] %vm106_vm0, %v299_v14  ;;  %309 = vst [vmem:[#allocation1 + $0x78] sm:$0xff] %v308_v17  ;;  %v390_v26 = vld [vmem:[#allocation1 + $0x38] sm:$0xff]  ;;  %v392_v10 = vld [vmem:[#allocation1 + $0x40] sm:$0xff] }
  0x21   :  { %383 = vst [vmem:[%s607_s1 + $0x18] sm:$0xff] %v382_v22  ;;  %385 = vst [vmem:[%s607_s1 + $0x20] sm:$0xff] %v384_v23  ;;  %v394_v27 = vld [vmem:[#allocation1 + $0x48] sm:$0xff]  ;;  %v396_v28 = vld [vmem:[#allocation1 + $0x50] sm:$0xff] }
  0x22   :  { %387 = vst [vmem:[%s607_s1 + $0x28] sm:$0xff] %v386_v24  ;;  %317 = vst.msk [vmem:[#allocation1 + $0x78] sm:$0xff] %vm106_vm0, %v313_v18  ;;  %v398_v29 = vld [vmem:[#allocation1 + $0x58] sm:$0xff] }
  0x23   :  { %389 = vst [vmem:[%s607_s1 + $0x30] sm:$0xff] %v388_v25  ;;  %391 = vst [vmem:[%s607_s1 + $0x38] sm:$0xff] %v390_v26  ;;  %v400_v30 = vld [vmem:[#allocation1 + $0x60] sm:$0xff] }
  0x24   :  { %393 = vst [vmem:[%s607_s1 + $0x40] sm:$0xff] %v392_v10  ;;  %395 = vst [vmem:[%s607_s1 + $0x48] sm:$0xff] %v394_v27  ;;  %v402_v31 = vld [vmem:[#allocation1 + $0x68] sm:$0xff] }
  0x25   :  { %397 = vst [vmem:[%s607_s1 + $0x50] sm:$0xff] %v396_v28  ;;  %399 = vst [vmem:[%s607_s1 + $0x58] sm:$0xff] %v398_v29 }
  0x26   :  { %401 = vst [vmem:[%s607_s1 + $0x60] sm:$0xff] %v400_v30  ;;  %403 = vst [vmem:[%s607_s1 + $0x68] sm:$0xff] %v402_v31 }
  0x27   :  { %v404_v32 = vld [vmem:[#allocation1 + $0x70] sm:$0xff] }
  0x28   :  { %405 = vst [vmem:[%s607_s1 + $0x70] sm:$0xff] %v404_v32 }
  0x29   :  { %v406_v33 = vld [vmem:[#allocation1 + $0x78] sm:$0xff] }
  0x2a   :  { %407 = vst [vmem:[%s607_s1 + $0x78] sm:$0xff] %v406_v33 }

// kernel: _lambda_.3
= control target key start
LH: loop header
LB: loop body
LE: loop exit
PB: predicated region body
PF: predicated region fallthrough
CT: control target
= control target key end

     0   :  { %s577_s15 = smov 0   ;;  %s579_s16 = smov 0   ;;  %s619_s0 = inlined_call_operand.vmem [shape: f32[2,8,256], index: 0, kind: input, shape index: {}]   ;;  %s620_s1 = inlined_call_operand.vmem [shape: f32[2,8,256], index: 1, kind: input, shape index: {}]   ;;  %s621_s2 = inlined_call_operand.vmem [shape: f32[8,8], index: 2, kind: input, shape index: {}]   ;;  %s622_s3 = inlined_call_operand.vmem [shape: f32[8,1], index: 3, kind: input, shape index: {}]   ;;  %s623_s4 = inlined_call_operand.vmem [shape: f32[2,8,256], index: 4, kind: output, shape index: {}]  }
   0x1   :  { %s581_s17 = smov 0  }
   0x2 LB: > { %s26_s18 = sadd.s32 1, %s544_s16  ;;  %p482_p0 = scmp.ge.s32.totalorder %s548_s17, 1  ;;  %s548_s17 = sphi %s581_s17, %s14_s17   ;;  %s544_s16 = sphi %s579_s16, %s625_s16   ;;  %s540_s15 = sphi %s577_s15, %s624_s15  }
   0x3   : > { %p28_p1 = scmp.ge.s32.totalorder %s26_s18, 2  ;;  %p200_p2 = scmp.lt.s32.totalorder %s548_s17, 3 }
   0x5   : > { %s627_s18 = smov (%p28_p1, %s26_s18), 0  ;;  %p201_p3 = pnand %p482_p0, %p200_p2 }
   0x6   : > { %p244_p4 = scmp.lt.s32.totalorder (!%p201_p3), %s540_s15, 1 }
   0x7   : > { %204 = sbr.rel (%p201_p3) target bundleno = 238 (0xee), region = 36 }
   0xc   : > { %v276_v0 = vld [vmem:[%s622_s3] sm:$0xff]  ;;  %v550_v1 = vmov 0.0   ;;  %v551_v2 = vmov 0   ;;  %s629_s15 = smov (!%p244_p4, %s540_s15), 1  ;;  %vm282_vm0 = vcmask 64512  }
   0xd   : > { %350 = vmatprep.mubr.f32.mxu0 %v550_v1  ;;  %521 = vset.pattern.permute.xlu0 %v551_v2  ;;  %s492_s21 = sshll.u32 %s629_s15, 4  ;;  %v275_v5 = vld [vmem:[%s621_s2] sm:$0xff] }
   0xe   : > { %279 = vperm.xlu0 %521, %v276_v0   ;;  %s251_s24 = scalar_lea.vmem %s619_s0, %s492_s21  ;;  %s261_s29 = scalar_lea.vmem %s620_s1, %s492_s21 }
   0xf   : > { %v274_v3 = vld [vmem:[%s251_s24 + $0x8] sm:$0xff]  ;;  %v273_v4 = vld [vmem:[%s251_s24] sm:$0xff]  ;;  %s271_s6 = scalar_lea.vmem %s623_s4, %s492_s21 }
  0x10   : > { %316 = vmatprep.subr.mxu0 %v274_v3  ;;  %v357_v8 = vld [vmem:[%s261_s29] sm:$0xff]  ;;  %v358_v11 = vld [vmem:[%s261_s29 + $0x8] sm:$0xff] }
  0x11   : > { %317 = vmatpush1.msra.mxu0 %v273_v4 }
  0x12   : > { %489 = vmatmul.mubr.msk.f32.vlgmr.msra.gmra.mxu0 %vm282_vm0, %v275_v5 }
  0x89   : > { %v280_v6 = vpop.permute.xlu0 %279 }
  0xd2   : > { %v352_v7 = vpop.f32.mrf.mxu0 }
  0xd3   : > { %v353_v9 = vadd.f32 %v352_v7, %v280_v6 }
  0xd4   : > { %v354_v10 = vpop.f32.mrf.mxu0 }
  0xd5   : > { %v359_v12 = vadd.f32 %v357_v8, %v353_v9  ;;  %v355_v13 = vadd.f32 %v354_v10, %v280_v6 }
  0xd7   : > { %v363_v14 = vmul.f32 0.70710677, %v359_v12  ;;  %v360_v15 = vadd.f32 %v358_v11, %v355_v13  ;;  %v361_v18 = vmul.f32 0.5, %v359_v12 }
  0xd9   : > { %522 = verf.f32 %v363_v14  ;;  %v364_v16 = vmul.f32 0.70710677, %v360_v15  ;;  %v362_v22 = vmul.f32 0.5, %v360_v15 }
  0xdb   : > { %524 = verf.f32 %v364_v16 }
  0xe6   : > { %v523_v17 = vpop.eup %522 }
  0xe7   : > { %v367_v19 = vadd.f32 1.0, %v523_v17 }
  0xe8   : > { %v525_v20 = vpop.eup %524 }
  0xe9   : > { %v369_v21 = vmul.f32 %v367_v19, %v361_v18  ;;  %v368_v23 = vadd.f32 1.0, %v525_v20 }
  0xeb   : > { %371 = vst [vmem:[%s271_s6] sm:$0xff] %v369_v21  ;;  %v370_v24 = vmul.f32 %v368_v23, %v362_v22 }
  0xed   : > { %372 = vst [vmem:[%s271_s6 + $0x8] sm:$0xff] %v370_v24 }
  0xee PF: > { %s14_s17 = sadd.s32 1, %s548_s17   ;;  %s624_s15 = smov %s544_s16 }
  0xef   : > { %p11_p5 = scmp.ge.s32.totalorder %s14_s17, 4   ;;  %s625_s16 = smov %s627_s18 }
  0xf1   :  { %13 = sbr.rel (!%p11_p5) target bundleno = 2 (0x2), region = 69 }

</bundles_post_ra>
